<compile_context>
chip_gen: v7x
topology: tpu7x:2x2x1
jax: 0.10.0
libtpu: 0.0.40
codegen_flags: <defaults>
</compile_context>

<pallas_src>
import functools
import math

import jax
import jax.numpy as jnp
from jax import lax
from jax.experimental import pallas as pl
from jax.experimental.pallas import tpu as pltpu


# --------------------------------------------------------------------------- #
# Fused kernel: QKV projection + per-head attention + output projection        #
# --------------------------------------------------------------------------- #
def _fused_mha_kernel(x_ref, wqkv_ref, bqkv_ref, wo_ref, bo_ref, o_ref, *,
                      num_heads, batch_group, seq_len, scale, compute_dtype):
    """One grid step processes `batch_group` full sequences.

    x_ref:    (batch_group*seq_len, D)   input rows (pipelined)
    wqkv_ref: (D, 3D)   fused [Wq^T | Wk^T | Wv^T]  (resident)
    bqkv_ref: (1, 3D)
    wo_ref:   (D, D)    Wo^T                         (resident)
    bo_ref:   (1, D)
    o_ref:    (batch_group*seq_len, D)   lane-dense output
    """
    D = wo_ref.shape[0]
    hd = D // num_heads
    cd = compute_dtype

    # Fused QKV projection: one MXU matmul over all rows of this grid step.
    x = x_ref[...].astype(cd)
    qkv = jnp.dot(x, wqkv_ref[...], preferred_element_type=jnp.float32)
    qkv = qkv + bqkv_ref[...]                                   # (rows, 3D) f32

    # Per-(sequence, head) attention using static slices -- no transposes.
    # TODO(synk): flash-style KV-tiled online softmax (extra "arbitrary" grid axis +
    # m/l/acc scratch) once T is large enough that the (T, T) score tile stresses
    # VMEM (~T>=1024 on v7x, ~T>=2048 on v5e/v6e).
    seq_outs = []
    for g in range(batch_group):
        r = g * seq_len
        head_outs = []
        for h in range(num_heads):
            c = h * hd
            q = (qkv[r:r + seq_len, c:c + hd] * scale).astype(cd)   # scale folded into q
            k = qkv[r:r + seq_len, D + c:D + c + hd].astype(cd)
            v = qkv[r:r + seq_len, 2 * D + c:2 * D + c + hd].astype(cd)
            # q @ k^T without materializing a transpose of k.
            s = lax.dot_general(q, k, (((1,), (1,)), ((), ())),
                                preferred_element_type=jnp.float32)  # (T, T)
            m = jnp.max(s, axis=-1, keepdims=True)                   # stable softmax
            p = jnp.exp(s - m)
            l = jnp.sum(p, axis=-1, keepdims=True)                   # (T, 1)
            oh = jnp.dot(p.astype(cd), v, preferred_element_type=jnp.float32)
            head_outs.append(oh * pl.reciprocal(l))    # normalize the small output
        seq_outs.append(jnp.concatenate(head_outs, axis=-1))          # (T, D)
    attn = jnp.concatenate(seq_outs, axis=0)                          # (rows, D) f32

    # Output projection.
    out = jnp.dot(attn.astype(cd), wo_ref[...], preferred_element_type=jnp.float32)
    o_ref[...] = (out + bo_ref[...]).astype(o_ref.dtype)


# --------------------------------------------------------------------------- #
# Parameter prep (hoisted out of the per-forward path)                         #
# --------------------------------------------------------------------------- #
def prepare_simple_self_attention_params(wq, bq, wk, bk, wv, bv, wo, bo,
                                         compute_dtype=None):
    """Fuse / transpose the nn.Linear weights once, outside the forward."""
    wd = jnp.dtype(compute_dtype) if compute_dtype is not None else wq.dtype
    wqkv_t = jnp.concatenate([wq.T, wk.T, wv.T], axis=1).astype(wd)   # (D, 3D)
    bqkv = jnp.concatenate([bq, bk, bv]).reshape(1, -1).astype(jnp.float32)
    wo_t = wo.T.astype(wd)                                            # (D, D)
    bo2 = bo.reshape(1, -1).astype(jnp.float32)
    return wqkv_t, bqkv, wo_t, bo2


def _choose_batch_group(batch, seq_len, target_rows=512):
    """Largest group of sequences whose row block is (8,128)-legal and <= target."""
    if batch * seq_len <= target_rows:
        return batch                      # full-array block is always legal
    cands = [g for g in range(1, batch + 1)
             if batch % g == 0 and (g * seq_len) % 8 == 0
             and g * seq_len <= target_rows]
    return max(cands) if cands else batch


# --------------------------------------------------------------------------- #
# Forward (matches PyTorch SimpleSelfAttention.forward)                        #
# --------------------------------------------------------------------------- #
def simple_self_attention_pallas(x, params, num_heads, *, compute_dtype=None,
                                 target_rows=512):
    """x: (B, T, D). params from prepare_simple_self_attention_params."""
    wqkv_t, bqkv, wo_t, bo2 = params
    B, T, D = x.shape
    assert D % num_heads == 0
    hd = D // num_heads
    scale = 1.0 / math.sqrt(hd)
    cd = jnp.dtype(compute_dtype) if compute_dtype is not None else x.dtype

    gb = _choose_batch_group(B, T, target_rows)
    rows = gb * T
    grid = (B // gb,)

    x2d = x.reshape(B * T, D)             # layout-preserving view, no HBM copy

    # VMEM budget: resident weights + double-buffered in/out blocks + f32 temporaries.
    itemsize = x.dtype.itemsize
    w_bytes = (wqkv_t.size * wqkv_t.dtype.itemsize
               + wo_t.size * wo_t.dtype.itemsize
               + (bqkv.size + bo2.size) * 4)
    act_bytes = 2 * 2 * rows * D * itemsize
    tmp_bytes = rows * 3 * D * 4 + 2 * T * T * 4 + rows * D * 4
    vmem_limit = int(min(64 << 20,
                         max(32 << 20, w_bytes + act_bytes + tmp_bytes + (8 << 20))))
    # TODO(synk): when 4*D^2 weight bytes no longer fit this budget (large D), add an
    # output-column grid axis and tile Wqkv^T / Wo^T instead of keeping them resident.

    kernel = functools.partial(
        _fused_mha_kernel, num_heads=num_heads, batch_group=gb, seq_len=T,
        scale=scale, compute_dtype=cd)

    flops = 2 * B * T * D * 3 * D + 4 * B * T * T * D + 2 * B * T * D * D
    bytes_accessed = 2 * B * T * D * itemsize + w_bytes

    out2d = pl.pallas_call(
        kernel,
        out_shape=jax.ShapeDtypeStruct((B * T, D), x.dtype),
        grid_spec=pl.GridSpec(
            grid=grid,
            in_specs=[
                pl.BlockSpec((rows, D), lambda i: (i, 0)),        # x rows (pipelined)
                pl.BlockSpec((D, 3 * D), lambda i: (0, 0)),       # Wqkv^T resident
                pl.BlockSpec((1, 3 * D), lambda i: (0, 0)),       # bqkv resident
                pl.BlockSpec((D, D), lambda i: (0, 0)),           # Wo^T resident
                pl.BlockSpec((1, D), lambda i: (0, 0)),           # bo resident
            ],
            out_specs=pl.BlockSpec((rows, D), lambda i: (i, 0)),  # lane-dense output
        ),
        compiler_params=pltpu.CompilerParams(
            dimension_semantics=("parallel",),
            vmem_limit_bytes=vmem_limit),
        cost_estimate=pl.CostEstimate(
            flops=flops,
            transcendentals=B * num_heads * T * T,
            bytes_accessed=bytes_accessed),
    )(x2d, wqkv_t, bqkv, wo_t, bo2)

    return out2d.reshape(B, T, D)


# --------------------------------------------------------------------------- #
# Demo + reference check                                                       #
# --------------------------------------------------------------------------- #
if __name__ == "__main__":
    batch, seq, embed_dim, num_heads = 2, 8, 32, 4
    head_dim = embed_dim // num_heads

    key = jax.random.PRNGKey(0)
    kx, kq, kbq, kk, kbk, kv, kbv, ko, kbo = jax.random.split(key, 9)

    x = jax.random.normal(kx, (batch, seq, embed_dim), dtype=jnp.float32)

    lim = 1.0 / (embed_dim ** 0.5)   # nn.Linear init range (uniform +-1/sqrt(fan_in))
    wq = jax.random.uniform(kq, (embed_dim, embed_dim), jnp.float32, -lim, lim)
    bq = jax.random.uniform(kbq, (embed_dim,), jnp.float32, -lim, lim)
    wk = jax.random.uniform(kk, (embed_dim, embed_dim), jnp.float32, -lim, lim)
    bk = jax.random.uniform(kbk, (embed_dim,), jnp.float32, -lim, lim)
    wv = jax.random.uniform(kv, (embed_dim, embed_dim), jnp.float32, -lim, lim)
    bv = jax.random.uniform(kbv, (embed_dim,), jnp.float32, -lim, lim)
    wo = jax.random.uniform(ko, (embed_dim, embed_dim), jnp.float32, -lim, lim)
    bo = jax.random.uniform(kbo, (embed_dim,), jnp.float32, -lim, lim)

    params = prepare_simple_self_attention_params(wq, bq, wk, bk, wv, bv, wo, bo)
    out = simple_self_attention_pallas(x, params, num_heads)
    out = jax.block_until_ready(out)

    # Pure-JAX reference mirroring the PyTorch forward.
    with jax.default_matmul_precision("highest"):
        q = (x @ wq.T + bq).reshape(batch, seq, num_heads, head_dim).transpose(0, 2, 1, 3)
        k = (x @ wk.T + bk).reshape(batch, seq, num_heads, head_dim).transpose(0, 2, 1, 3)
        v = (x @ wv.T + bv).reshape(batch, seq, num_heads, head_dim).transpose(0, 2, 1, 3)
        s = jnp.einsum("bhtd,bhsd->bhts", q, k) / (head_dim ** 0.5)
        p = jax.nn.softmax(s, axis=-1)
        o = jnp.einsum("bhts,bhsd->bhtd", p, v)
        o = o.transpose(0, 2, 1, 3).reshape(batch, seq, embed_dim)
        ref = o @ wo.T + bo

    assert out.shape == (batch, seq, embed_dim)
    err = jnp.max(jnp.abs(out - ref))
    assert jnp.allclose(out, ref, atol=2e-4, rtol=2e-4), f"max abs err = {err}"

    print("KERNEL_OK")
</pallas_src>

<mosaic_0001>
module attributes {stable_mosaic.version = 11 : i64} {
  func.func @_fused_mha_kernel(%arg0: i32, %arg1: memref<16x32xf32, #tpu.memory_space<vmem>>, %arg2: memref<32x96xf32, #tpu.memory_space<vmem>>, %arg3: memref<1x96xf32, #tpu.memory_space<vmem>>, %arg4: memref<32x32xf32, #tpu.memory_space<vmem>>, %arg5: memref<1x32xf32, #tpu.memory_space<vmem>>, %arg6: memref<16x32xf32, #tpu.memory_space<vmem>>) attributes {dimension_semantics = [#tpu.dimension_semantics<parallel>], iteration_bounds = array<i64: 1>, scalar_prefetch = 0 : i64, scratch_operands = 0 : i64, tpu.core_type = #tpu.core_type<tc>, window_params = [{transform_indices = @transform_0, window_bounds = array<i64: 16, 32>}, {pipeline_mode = #tpu.pipeline_mode<synchronous>, transform_indices = @transform_1, window_bounds = array<i64: 32, 96>}, {pipeline_mode = #tpu.pipeline_mode<synchronous>, transform_indices = @transform_2, window_bounds = array<i64: 1, 96>}, {pipeline_mode = #tpu.pipeline_mode<synchronous>, transform_indices = @transform_3, window_bounds = array<i64: 32, 32>}, {pipeline_mode = #tpu.pipeline_mode<synchronous>, transform_indices = @transform_4, window_bounds = array<i64: 1, 32>}, {transform_indices = @transform_5, window_bounds = array<i64: 16, 32>}]} {
    %c0 = arith.constant 0 : index
    %c0_0 = arith.constant 0 : index
    %0 = vector.load %arg1[%c0, %c0_0] : memref<16x32xf32, #tpu.memory_space<vmem>>, vector<16x32xf32>
    %c0_1 = arith.constant 0 : index
    %c0_2 = arith.constant 0 : index
    %1 = vector.load %arg2[%c0_1, %c0_2] : memref<32x96xf32, #tpu.memory_space<vmem>>, vector<32x96xf32>
    %cst = arith.constant dense<0.000000e+00> : vector<16x96xf32>
    %2 = tpu.matmul %0, %1, %cst {dimension_numbers = #tpu.dot_dimension_numbers<[1], [0], [0], [1], [0, 0, 1, 1], [], []>} : vector<16x32xf32>, vector<32x96xf32>, vector<16x96xf32> -> vector<16x96xf32>
    %c0_3 = arith.constant 0 : index
    %c0_4 = arith.constant 0 : index
    %3 = vector.load %arg3[%c0_3, %c0_4] : memref<1x96xf32, #tpu.memory_space<vmem>>, vector<1x96xf32>
    %4 = vector.broadcast %3 : vector<1x96xf32> to vector<16x96xf32>
    %5 = arith.addf %2, %4 : vector<16x96xf32>
    %6 = vector.extract_strided_slice %5 {offsets = [0, 0], sizes = [8, 8], strides = [1, 1]} : vector<16x96xf32> to vector<8x8xf32>
    %cst_5 = arith.constant 0.353553385 : f32
    %7 = vector.broadcast %cst_5 : f32 to vector<8x8xf32>
    %8 = arith.mulf %6, %7 : vector<8x8xf32>
    %9 = vector.extract_strided_slice %5 {offsets = [0, 32], sizes = [8, 8], strides = [1, 1]} : vector<16x96xf32> to vector<8x8xf32>
    %10 = vector.extract_strided_slice %5 {offsets = [0, 64], sizes = [8, 8], strides = [1, 1]} : vector<16x96xf32> to vector<8x8xf32>
    %cst_6 = arith.constant dense<0.000000e+00> : vector<8x8xf32>
    %11 = tpu.matmul %8, %9, %cst_6 {dimension_numbers = #tpu.dot_dimension_numbers<[1], [1], [0], [0], [0, 0, 1, 0], [], []>} : vector<8x8xf32>, vector<8x8xf32>, vector<8x8xf32> -> vector<8x8xf32>
    %cst_7 = arith.constant dense<0xFF800000> : vector<8xf32>
    %12 = vector.multi_reduction <maximumf>, %11, %cst_7 [1] : vector<8x8xf32> to vector<8xf32>
    %13 = vector.shape_cast %12 : vector<8xf32> to vector<8x1xf32>
    %14 = vector.broadcast %13 : vector<8x1xf32> to vector<8x8xf32>
    %15 = arith.subf %11, %14 : vector<8x8xf32>
    %16 = math.exp %15 : vector<8x8xf32>
    %cst_8 = arith.constant dense<0.000000e+00> : vector<8xf32>
    %17 = vector.multi_reduction <add>, %16, %cst_8 [1] : vector<8x8xf32> to vector<8xf32>
    %18 = vector.shape_cast %17 : vector<8xf32> to vector<8x1xf32>
    %cst_9 = arith.constant dense<0.000000e+00> : vector<8x8xf32>
    %19 = tpu.matmul %16, %10, %cst_9 {dimension_numbers = #tpu.dot_dimension_numbers<[1], [0], [0], [1], [0, 0, 1, 1], [], []>} : vector<8x8xf32>, vector<8x8xf32>, vector<8x8xf32> -> vector<8x8xf32>
    %20 = tpu.reciprocal %18 : vector<8x1xf32> -> vector<8x1xf32>
    %21 = vector.broadcast %20 : vector<8x1xf32> to vector<8x8xf32>
    %22 = arith.mulf %19, %21 : vector<8x8xf32>
    %23 = vector.extract_strided_slice %5 {offsets = [0, 8], sizes = [8, 8], strides = [1, 1]} : vector<16x96xf32> to vector<8x8xf32>
    %cst_10 = arith.constant 0.353553385 : f32
    %24 = vector.broadcast %cst_10 : f32 to vector<8x8xf32>
    %25 = arith.mulf %23, %24 : vector<8x8xf32>
    %26 = vector.extract_strided_slice %5 {offsets = [0, 40], sizes = [8, 8], strides = [1, 1]} : vector<16x96xf32> to vector<8x8xf32>
    %27 = vector.extract_strided_slice %5 {offsets = [0, 72], sizes = [8, 8], strides = [1, 1]} : vector<16x96xf32> to vector<8x8xf32>
    %cst_11 = arith.constant dense<0.000000e+00> : vector<8x8xf32>
    %28 = tpu.matmul %25, %26, %cst_11 {dimension_numbers = #tpu.dot_dimension_numbers<[1], [1], [0], [0], [0, 0, 1, 0], [], []>} : vector<8x8xf32>, vector<8x8xf32>, vector<8x8xf32> -> vector<8x8xf32>
    %cst_12 = arith.constant dense<0xFF800000> : vector<8xf32>
    %29 = vector.multi_reduction <maximumf>, %28, %cst_12 [1] : vector<8x8xf32> to vector<8xf32>
    %30 = vector.shape_cast %29 : vector<8xf32> to vector<8x1xf32>
    %31 = vector.broadcast %30 : vector<8x1xf32> to vector<8x8xf32>
    %32 = arith.subf %28, %31 : vector<8x8xf32>
    %33 = math.exp %32 : vector<8x8xf32>
    %cst_13 = arith.constant dense<0.000000e+00> : vector<8xf32>
    %34 = vector.multi_reduction <add>, %33, %cst_13 [1] : vector<8x8xf32> to vector<8xf32>
    %35 = vector.shape_cast %34 : vector<8xf32> to vector<8x1xf32>
    %cst_14 = arith.constant dense<0.000000e+00> : vector<8x8xf32>
    %36 = tpu.matmul %33, %27, %cst_14 {dimension_numbers = #tpu.dot_dimension_numbers<[1], [0], [0], [1], [0, 0, 1, 1], [], []>} : vector<8x8xf32>, vector<8x8xf32>, vector<8x8xf32> -> vector<8x8xf32>
    %37 = tpu.reciprocal %35 : vector<8x1xf32> -> vector<8x1xf32>
    %38 = vector.broadcast %37 : vector<8x1xf32> to vector<8x8xf32>
    %39 = arith.mulf %36, %38 : vector<8x8xf32>
    %40 = vector.extract_strided_slice %5 {offsets = [0, 16], sizes = [8, 8], strides = [1, 1]} : vector<16x96xf32> to vector<8x8xf32>
    %cst_15 = arith.constant 0.353553385 : f32
    %41 = vector.broadcast %cst_15 : f32 to vector<8x8xf32>
    %42 = arith.mulf %40, %41 : vector<8x8xf32>
    %43 = vector.extract_strided_slice %5 {offsets = [0, 48], sizes = [8, 8], strides = [1, 1]} : vector<16x96xf32> to vector<8x8xf32>
    %44 = vector.extract_strided_slice %5 {offsets = [0, 80], sizes = [8, 8], strides = [1, 1]} : vector<16x96xf32> to vector<8x8xf32>
    %cst_16 = arith.constant dense<0.000000e+00> : vector<8x8xf32>
    %45 = tpu.matmul %42, %43, %cst_16 {dimension_numbers = #tpu.dot_dimension_numbers<[1], [1], [0], [0], [0, 0, 1, 0], [], []>} : vector<8x8xf32>, vector<8x8xf32>, vector<8x8xf32> -> vector<8x8xf32>
    %cst_17 = arith.constant dense<0xFF800000> : vector<8xf32>
    %46 = vector.multi_reduction <maximumf>, %45, %cst_17 [1] : vector<8x8xf32> to vector<8xf32>
    %47 = vector.shape_cast %46 : vector<8xf32> to vector<8x1xf32>
    %48 = vector.broadcast %47 : vector<8x1xf32> to vector<8x8xf32>
    %49 = arith.subf %45, %48 : vector<8x8xf32>
    %50 = math.exp %49 : vector<8x8xf32>
    %cst_18 = arith.constant dense<0.000000e+00> : vector<8xf32>
    %51 = vector.multi_reduction <add>, %50, %cst_18 [1] : vector<8x8xf32> to vector<8xf32>
    %52 = vector.shape_cast %51 : vector<8xf32> to vector<8x1xf32>
    %cst_19 = arith.constant dense<0.000000e+00> : vector<8x8xf32>
    %53 = tpu.matmul %50, %44, %cst_19 {dimension_numbers = #tpu.dot_dimension_numbers<[1], [0], [0], [1], [0, 0, 1, 1], [], []>} : vector<8x8xf32>, vector<8x8xf32>, vector<8x8xf32> -> vector<8x8xf32>
    %54 = tpu.reciprocal %52 : vector<8x1xf32> -> vector<8x1xf32>
    %55 = vector.broadcast %54 : vector<8x1xf32> to vector<8x8xf32>
    %56 = arith.mulf %53, %55 : vector<8x8xf32>
    %57 = vector.extract_strided_slice %5 {offsets = [0, 24], sizes = [8, 8], strides = [1, 1]} : vector<16x96xf32> to vector<8x8xf32>
    %cst_20 = arith.constant 0.353553385 : f32
    %58 = vector.broadcast %cst_20 : f32 to vector<8x8xf32>
    %59 = arith.mulf %57, %58 : vector<8x8xf32>
    %60 = vector.extract_strided_slice %5 {offsets = [0, 56], sizes = [8, 8], strides = [1, 1]} : vector<16x96xf32> to vector<8x8xf32>
    %61 = vector.extract_strided_slice %5 {offsets = [0, 88], sizes = [8, 8], strides = [1, 1]} : vector<16x96xf32> to vector<8x8xf32>
    %cst_21 = arith.constant dense<0.000000e+00> : vector<8x8xf32>
    %62 = tpu.matmul %59, %60, %cst_21 {dimension_numbers = #tpu.dot_dimension_numbers<[1], [1], [0], [0], [0, 0, 1, 0], [], []>} : vector<8x8xf32>, vector<8x8xf32>, vector<8x8xf32> -> vector<8x8xf32>
    %cst_22 = arith.constant dense<0xFF800000> : vector<8xf32>
    %63 = vector.multi_reduction <maximumf>, %62, %cst_22 [1] : vector<8x8xf32> to vector<8xf32>
    %64 = vector.shape_cast %63 : vector<8xf32> to vector<8x1xf32>
    %65 = vector.broadcast %64 : vector<8x1xf32> to vector<8x8xf32>
    %66 = arith.subf %62, %65 : vector<8x8xf32>
    %67 = math.exp %66 : vector<8x8xf32>
    %cst_23 = arith.constant dense<0.000000e+00> : vector<8xf32>
    %68 = vector.multi_reduction <add>, %67, %cst_23 [1] : vector<8x8xf32> to vector<8xf32>
    %69 = vector.shape_cast %68 : vector<8xf32> to vector<8x1xf32>
    %cst_24 = arith.constant dense<0.000000e+00> : vector<8x8xf32>
    %70 = tpu.matmul %67, %61, %cst_24 {dimension_numbers = #tpu.dot_dimension_numbers<[1], [0], [0], [1], [0, 0, 1, 1], [], []>} : vector<8x8xf32>, vector<8x8xf32>, vector<8x8xf32> -> vector<8x8xf32>
    %71 = tpu.reciprocal %69 : vector<8x1xf32> -> vector<8x1xf32>
    %72 = vector.broadcast %71 : vector<8x1xf32> to vector<8x8xf32>
    %73 = arith.mulf %70, %72 : vector<8x8xf32>
    %74 = tpu.concatenate %22, %39, %56, %73 in 1 : vector<8x8xf32>, vector<8x8xf32>, vector<8x8xf32>, vector<8x8xf32> -> vector<8x32xf32>
    %75 = vector.extract_strided_slice %5 {offsets = [8, 0], sizes = [8, 8], strides = [1, 1]} : vector<16x96xf32> to vector<8x8xf32>
    %cst_25 = arith.constant 0.353553385 : f32
    %76 = vector.broadcast %cst_25 : f32 to vector<8x8xf32>
    %77 = arith.mulf %75, %76 : vector<8x8xf32>
    %78 = vector.extract_strided_slice %5 {offsets = [8, 32], sizes = [8, 8], strides = [1, 1]} : vector<16x96xf32> to vector<8x8xf32>
    %79 = vector.extract_strided_slice %5 {offsets = [8, 64], sizes = [8, 8], strides = [1, 1]} : vector<16x96xf32> to vector<8x8xf32>
    %cst_26 = arith.constant dense<0.000000e+00> : vector<8x8xf32>
    %80 = tpu.matmul %77, %78, %cst_26 {dimension_numbers = #tpu.dot_dimension_numbers<[1], [1], [0], [0], [0, 0, 1, 0], [], []>} : vector<8x8xf32>, vector<8x8xf32>, vector<8x8xf32> -> vector<8x8xf32>
    %cst_27 = arith.constant dense<0xFF800000> : vector<8xf32>
    %81 = vector.multi_reduction <maximumf>, %80, %cst_27 [1] : vector<8x8xf32> to vector<8xf32>
    %82 = vector.shape_cast %81 : vector<8xf32> to vector<8x1xf32>
    %83 = vector.broadcast %82 : vector<8x1xf32> to vector<8x8xf32>
    %84 = arith.subf %80, %83 : vector<8x8xf32>
    %85 = math.exp %84 : vector<8x8xf32>
    %cst_28 = arith.constant dense<0.000000e+00> : vector<8xf32>
    %86 = vector.multi_reduction <add>, %85, %cst_28 [1] : vector<8x8xf32> to vector<8xf32>
    %87 = vector.shape_cast %86 : vector<8xf32> to vector<8x1xf32>
    %cst_29 = arith.constant dense<0.000000e+00> : vector<8x8xf32>
    %88 = tpu.matmul %85, %79, %cst_29 {dimension_numbers = #tpu.dot_dimension_numbers<[1], [0], [0], [1], [0, 0, 1, 1], [], []>} : vector<8x8xf32>, vector<8x8xf32>, vector<8x8xf32> -> vector<8x8xf32>
    %89 = tpu.reciprocal %87 : vector<8x1xf32> -> vector<8x1xf32>
    %90 = vector.broadcast %89 : vector<8x1xf32> to vector<8x8xf32>
    %91 = arith.mulf %88, %90 : vector<8x8xf32>
    %92 = vector.extract_strided_slice %5 {offsets = [8, 8], sizes = [8, 8], strides = [1, 1]} : vector<16x96xf32> to vector<8x8xf32>
    %cst_30 = arith.constant 0.353553385 : f32
    %93 = vector.broadcast %cst_30 : f32 to vector<8x8xf32>
    %94 = arith.mulf %92, %93 : vector<8x8xf32>
    %95 = vector.extract_strided_slice %5 {offsets = [8, 40], sizes = [8, 8], strides = [1, 1]} : vector<16x96xf32> to vector<8x8xf32>
    %96 = vector.extract_strided_slice %5 {offsets = [8, 72], sizes = [8, 8], strides = [1, 1]} : vector<16x96xf32> to vector<8x8xf32>
    %cst_31 = arith.constant dense<0.000000e+00> : vector<8x8xf32>
    %97 = tpu.matmul %94, %95, %cst_31 {dimension_numbers = #tpu.dot_dimension_numbers<[1], [1], [0], [0], [0, 0, 1, 0], [], []>} : vector<8x8xf32>, vector<8x8xf32>, vector<8x8xf32> -> vector<8x8xf32>
    %cst_32 = arith.constant dense<0xFF800000> : vector<8xf32>
    %98 = vector.multi_reduction <maximumf>, %97, %cst_32 [1] : vector<8x8xf32> to vector<8xf32>
    %99 = vector.shape_cast %98 : vector<8xf32> to vector<8x1xf32>
    %100 = vector.broadcast %99 : vector<8x1xf32> to vector<8x8xf32>
    %101 = arith.subf %97, %100 : vector<8x8xf32>
    %102 = math.exp %101 : vector<8x8xf32>
    %cst_33 = arith.constant dense<0.000000e+00> : vector<8xf32>
    %103 = vector.multi_reduction <add>, %102, %cst_33 [1] : vector<8x8xf32> to vector<8xf32>
    %104 = vector.shape_cast %103 : vector<8xf32> to vector<8x1xf32>
    %cst_34 = arith.constant dense<0.000000e+00> : vector<8x8xf32>
    %105 = tpu.matmul %102, %96, %cst_34 {dimension_numbers = #tpu.dot_dimension_numbers<[1], [0], [0], [1], [0, 0, 1, 1], [], []>} : vector<8x8xf32>, vector<8x8xf32>, vector<8x8xf32> -> vector<8x8xf32>
    %106 = tpu.reciprocal %104 : vector<8x1xf32> -> vector<8x1xf32>
    %107 = vector.broadcast %106 : vector<8x1xf32> to vector<8x8xf32>
    %108 = arith.mulf %105, %107 : vector<8x8xf32>
    %109 = vector.extract_strided_slice %5 {offsets = [8, 16], sizes = [8, 8], strides = [1, 1]} : vector<16x96xf32> to vector<8x8xf32>
    %cst_35 = arith.constant 0.353553385 : f32
    %110 = vector.broadcast %cst_35 : f32 to vector<8x8xf32>
    %111 = arith.mulf %109, %110 : vector<8x8xf32>
    %112 = vector.extract_strided_slice %5 {offsets = [8, 48], sizes = [8, 8], strides = [1, 1]} : vector<16x96xf32> to vector<8x8xf32>
    %113 = vector.extract_strided_slice %5 {offsets = [8, 80], sizes = [8, 8], strides = [1, 1]} : vector<16x96xf32> to vector<8x8xf32>
    %cst_36 = arith.constant dense<0.000000e+00> : vector<8x8xf32>
    %114 = tpu.matmul %111, %112, %cst_36 {dimension_numbers = #tpu.dot_dimension_numbers<[1], [1], [0], [0], [0, 0, 1, 0], [], []>} : vector<8x8xf32>, vector<8x8xf32>, vector<8x8xf32> -> vector<8x8xf32>
    %cst_37 = arith.constant dense<0xFF800000> : vector<8xf32>
    %115 = vector.multi_reduction <maximumf>, %114, %cst_37 [1] : vector<8x8xf32> to vector<8xf32>
    %116 = vector.shape_cast %115 : vector<8xf32> to vector<8x1xf32>
    %117 = vector.broadcast %116 : vector<8x1xf32> to vector<8x8xf32>
    %118 = arith.subf %114, %117 : vector<8x8xf32>
    %119 = math.exp %118 : vector<8x8xf32>
    %cst_38 = arith.constant dense<0.000000e+00> : vector<8xf32>
    %120 = vector.multi_reduction <add>, %119, %cst_38 [1] : vector<8x8xf32> to vector<8xf32>
    %121 = vector.shape_cast %120 : vector<8xf32> to vector<8x1xf32>
    %cst_39 = arith.constant dense<0.000000e+00> : vector<8x8xf32>
    %122 = tpu.matmul %119, %113, %cst_39 {dimension_numbers = #tpu.dot_dimension_numbers<[1], [0], [0], [1], [0, 0, 1, 1], [], []>} : vector<8x8xf32>, vector<8x8xf32>, vector<8x8xf32> -> vector<8x8xf32>
    %123 = tpu.reciprocal %121 : vector<8x1xf32> -> vector<8x1xf32>
    %124 = vector.broadcast %123 : vector<8x1xf32> to vector<8x8xf32>
    %125 = arith.mulf %122, %124 : vector<8x8xf32>
    %126 = vector.extract_strided_slice %5 {offsets = [8, 24], sizes = [8, 8], strides = [1, 1]} : vector<16x96xf32> to vector<8x8xf32>
    %cst_40 = arith.constant 0.353553385 : f32
    %127 = vector.broadcast %cst_40 : f32 to vector<8x8xf32>
    %128 = arith.mulf %126, %127 : vector<8x8xf32>
    %129 = vector.extract_strided_slice %5 {offsets = [8, 56], sizes = [8, 8], strides = [1, 1]} : vector<16x96xf32> to vector<8x8xf32>
    %130 = vector.extract_strided_slice %5 {offsets = [8, 88], sizes = [8, 8], strides = [1, 1]} : vector<16x96xf32> to vector<8x8xf32>
    %cst_41 = arith.constant dense<0.000000e+00> : vector<8x8xf32>
    %131 = tpu.matmul %128, %129, %cst_41 {dimension_numbers = #tpu.dot_dimension_numbers<[1], [1], [0], [0], [0, 0, 1, 0], [], []>} : vector<8x8xf32>, vector<8x8xf32>, vector<8x8xf32> -> vector<8x8xf32>
    %cst_42 = arith.constant dense<0xFF800000> : vector<8xf32>
    %132 = vector.multi_reduction <maximumf>, %131, %cst_42 [1] : vector<8x8xf32> to vector<8xf32>
    %133 = vector.shape_cast %132 : vector<8xf32> to vector<8x1xf32>
    %134 = vector.broadcast %133 : vector<8x1xf32> to vector<8x8xf32>
    %135 = arith.subf %131, %134 : vector<8x8xf32>
    %136 = math.exp %135 : vector<8x8xf32>
    %cst_43 = arith.constant dense<0.000000e+00> : vector<8xf32>
    %137 = vector.multi_reduction <add>, %136, %cst_43 [1] : vector<8x8xf32> to vector<8xf32>
    %138 = vector.shape_cast %137 : vector<8xf32> to vector<8x1xf32>
    %cst_44 = arith.constant dense<0.000000e+00> : vector<8x8xf32>
    %139 = tpu.matmul %136, %130, %cst_44 {dimension_numbers = #tpu.dot_dimension_numbers<[1], [0], [0], [1], [0, 0, 1, 1], [], []>} : vector<8x8xf32>, vector<8x8xf32>, vector<8x8xf32> -> vector<8x8xf32>
    %140 = tpu.reciprocal %138 : vector<8x1xf32> -> vector<8x1xf32>
    %141 = vector.broadcast %140 : vector<8x1xf32> to vector<8x8xf32>
    %142 = arith.mulf %139, %141 : vector<8x8xf32>
    %143 = tpu.concatenate %91, %108, %125, %142 in 1 : vector<8x8xf32>, vector<8x8xf32>, vector<8x8xf32>, vector<8x8xf32> -> vector<8x32xf32>
    %144 = tpu.concatenate %74, %143 in 0 : vector<8x32xf32>, vector<8x32xf32> -> vector<16x32xf32>
    %c0_45 = arith.constant 0 : index
    %c0_46 = arith.constant 0 : index
    %145 = vector.load %arg4[%c0_45, %c0_46] : memref<32x32xf32, #tpu.memory_space<vmem>>, vector<32x32xf32>
    %cst_47 = arith.constant dense<0.000000e+00> : vector<16x32xf32>
    %146 = tpu.matmul %144, %145, %cst_47 {dimension_numbers = #tpu.dot_dimension_numbers<[1], [0], [0], [1], [0, 0, 1, 1], [], []>} : vector<16x32xf32>, vector<32x32xf32>, vector<16x32xf32> -> vector<16x32xf32>
    %c0_48 = arith.constant 0 : index
    %c0_49 = arith.constant 0 : index
    %147 = vector.load %arg5[%c0_48, %c0_49] : memref<1x32xf32, #tpu.memory_space<vmem>>, vector<1x32xf32>
    %148 = vector.broadcast %147 : vector<1x32xf32> to vector<16x32xf32>
    %149 = arith.addf %146, %148 : vector<16x32xf32>
    %c0_50 = arith.constant 0 : index
    %c0_51 = arith.constant 0 : index
    %150 = vector.load %arg6[%c0_50, %c0_51] : memref<16x32xf32, #tpu.memory_space<vmem>>, vector<16x32xf32>
    tpu.vector_store %arg6[%c0_50, %c0_51], %149 {strides = array<i32>} : memref<16x32xf32, #tpu.memory_space<vmem>>, vector<16x32xf32>,
    return
  }
  func.func @transform_0(%arg0: i32) -> (i32, i32) {
    %c0_i32 = arith.constant 0 : i32
    %c0_i32_0 = arith.constant 0 : i32
    return %arg0, %c0_i32 : i32, i32
  }
  func.func @transform_1(%arg0: i32) -> (i32, i32) {
    %c0_i32 = arith.constant 0 : i32
    %c0_i32_0 = arith.constant 0 : i32
    %c0_i32_1 = arith.constant 0 : i32
    return %c0_i32, %c0_i32_0 : i32, i32
  }
  func.func @transform_2(%arg0: i32) -> (i32, i32) {
    %c0_i32 = arith.constant 0 : i32
    %c0_i32_0 = arith.constant 0 : i32
    %c0_i32_1 = arith.constant 0 : i32
    return %c0_i32, %c0_i32_0 : i32, i32
  }
  func.func @transform_3(%arg0: i32) -> (i32, i32) {
    %c0_i32 = arith.constant 0 : i32
    %c0_i32_0 = arith.constant 0 : i32
    %c0_i32_1 = arith.constant 0 : i32
    return %c0_i32, %c0_i32_0 : i32, i32
  }
  func.func @transform_4(%arg0: i32) -> (i32, i32) {
    %c0_i32 = arith.constant 0 : i32
    %c0_i32_0 = arith.constant 0 : i32
    %c0_i32_1 = arith.constant 0 : i32
    return %c0_i32, %c0_i32_0 : i32, i32
  }
  func.func @transform_5(%arg0: i32) -> (i32, i32) {
    %c0_i32 = arith.constant 0 : i32
    %c0_i32_0 = arith.constant 0 : i32
    return %arg0, %c0_i32 : i32, i32
  }
}

</mosaic_0001>

<bundles_post_ra>
// kernel: tpu_custom_call.1
= control target key start
LH: loop header
LB: loop body
LE: loop exit
PB: predicated region body
PF: predicated region fallthrough
CT: control target
= control target key end

     0   :  { %10 = vsyncpa [#allocation3], 0  ;;  %s2240_s0 = inlined_call_operand.hbm [shape: f32[16,32], index: 0, kind: input, shape index: {}]   ;;  %s2241_s1 = inlined_call_operand.hbm [shape: f32[32,96], index: 1, kind: input, shape index: {}]   ;;  %s2242_s2 = inlined_call_operand.vmem [shape: f32[1,96], index: 2, kind: input, shape index: {}]   ;;  %s2243_s3 = inlined_call_operand.hbm [shape: f32[32,32], index: 3, kind: input, shape index: {}]   ;;  %s2244_s4 = inlined_call_operand.vmem [shape: f32[1,32], index: 4, kind: input, shape index: {}]   ;;  %s2245_s5 = inlined_call_operand.hbm [shape: f32[16,32], index: 5, kind: output, shape index: {}]  }
   0x1   :  { %11 = vsyncpa [#allocation6], 0 }
   0x2   :  { %12 = vsyncpa [#allocation4], 0  ;;  %s1963_s18 = smov [#allocation5]   ;;  %s1964_s20 = smov [#allocation2]  }
   0x3   :  { %s30_s19 = sshll.u32 %s1963_s18, 4  ;;  %s18_s21 = sshll.u32 %s1964_s20, 4  ;;  %s31_s19 = int_to_ptr.vmem [resolvable:$true] %s30_s19  ;;  %s2014_s21 = int_to_ptr.vmem [resolvable:$true] %s18_s21 }
   0x4   :  { %s1869_s24 = scalar_lea.hbm %s2241_s1, 512 }
   0x5   :  { %p1870_p0 = scmp.ne.s32.totalorder %s2241_s1, %s1869_s24  ;;  %p1873_p1 = scmp.lt.u32.totalorder %s1869_s24, %s2241_s1 }
   0x7   :  { %p1875_p2 = pnand %p1873_p1, %p1870_p0 }
   0x9   :  { %1878 = shalt.err (!%p1875_p2)
}
   0xa   :  { %s1879_s29 = scalar_lea.vmem %s31_s19, 512  ;;  %p1884_p4 = scmp.lt.s32.totalorder %s31_s19, %s31_s19 }
   0xb   :  { %p1880_p3 = scmp.ne.s32.totalorder %s31_s19, %s1879_s29  ;;  %p1885_p5 = scmp.lt.s32.totalorder %s1879_s29, %s1879_s29 }
   0xd   :  { %p1886_p6 = por %p1885_p5, %p1884_p4 }
   0xf   :  { %p1887_p7 = pnand %p1886_p6, %p1880_p3 }
  0x11   :  { %1890 = shalt.err (!%p1887_p7)
}
  0x12   :  { %s1965_s30 = smov 128   ;;  %s1966_s6 = smov 8  }
  0x13   :  { %36 = dma.hbm_to_vmem [thread:$0]  %s2241_s1, 512, %s31_s19, [#allocation6], %s1965_s30, %s1965_s30, %s1966_s6  }
  0x14   :  { %s1891_s11 = scalar_lea.hbm %s2240_s0, 256 }
  0x15   :  { %p1892_p8 = scmp.ne.s32.totalorder %s2240_s0, %s1891_s11  ;;  %p1895_p9 = scmp.lt.u32.totalorder %s1891_s11, %s2240_s0 }
  0x17   :  { %p1897_p10 = pnand %p1895_p9, %p1892_p8 }
  0x19   :  { %1900 = shalt.err (!%p1897_p10)
}
  0x1a   :  { %s1901_s16 = scalar_lea.vmem %s2014_s21, 256  ;;  %p1906_p12 = scmp.lt.s32.totalorder %s2014_s21, %s2014_s21 }
  0x1b   :  { %p1902_p11 = scmp.ne.s32.totalorder %s2014_s21, %s1901_s16  ;;  %p1907_p13 = scmp.lt.s32.totalorder %s1901_s16, %s1901_s16 }
  0x1d   :  { %p1908_p0 = por %p1907_p13, %p1906_p12 }
  0x1f   :  { %p1909_p1 = pnand %p1908_p0, %p1902_p11 }
  0x21   :  { %1912 = shalt.err (!%p1909_p1)
}
  0x22   :  { %24 = dma.hbm_to_vmem [thread:$0]  %s2240_s0, 256, %s2014_s21, [#allocation3], %s1965_s30, %s1965_s30, %s1966_s6  }
  0x23   :  { %s1967_s18 = smov [#allocation7]   ;;  %s1913_s23 = scalar_lea.hbm %s2243_s3, 512 }
  0x24   :  { %s44_s19 = sshll.u32 %s1967_s18, 4  ;;  %p1914_p2 = scmp.ne.s32.totalorder %s2243_s3, %s1913_s23  ;;  %s45_s19 = int_to_ptr.vmem [resolvable:$true] %s44_s19 }
  0x25   :  { %p1917_p3 = scmp.lt.u32.totalorder %s1913_s23, %s2243_s3 }
  0x27   :  { %p1919_p4 = pnand %p1917_p3, %p1914_p2 }
  0x29   :  { %1922 = shalt.err (!%p1919_p4)
}
  0x2a   :  { %s1923_s28 = scalar_lea.vmem %s45_s19, 512  ;;  %p1928_p6 = scmp.lt.s32.totalorder %s45_s19, %s45_s19 }
  0x2b   :  { %p1924_p5 = scmp.ne.s32.totalorder %s45_s19, %s1923_s28  ;;  %p1929_p7 = scmp.lt.s32.totalorder %s1923_s28, %s1923_s28 }
  0x2d   :  { %p1930_p8 = por %p1929_p7, %p1928_p6 }
  0x2f   :  { %p1931_p9 = pnand %p1930_p8, %p1924_p5 }
  0x31   :  { %1934 = shalt.err (!%p1931_p9)
}
  0x32   :  { %50 = dma.hbm_to_vmem [thread:$0]  %s2243_s3, 512, %s45_s19, [#allocation6], %s1965_s30, %s1965_s30, %s1966_s6  }
  0x33   :  { %1957 = dma.done.wait [#allocation3], 256  }
  0x34   :  { %1958 = vsyncadd [#allocation3], 4294967040 }
  0x35   :  { %1959 = dma.done.wait [#allocation6], 1024  }
  0x36   :  { %1960 = vsyncadd [#allocation6], 4294966272  ;;  %vm75_vm0 = vcmask 261120   ;;  %v64_v0 = vld [vmem:[#allocation5] sm:$0xff]  ;;  %v65_v1 = vld [vmem:[#allocation5 + $0x8] sm:$0xff]  ;;  %v1968_v8 = vmov 0.0  }
  0x37   :  { %v66_v2 = vld [vmem:[#allocation5 + $0x10] sm:$0xff]  ;;  %v1800_v3 = vpack.c.bf16 %v65_v1, %v64_v0  ;;  %v67_v4 = vld [vmem:[#allocation5 + $0x18] sm:$0xff]  ;;  %1709 = vmatprep.subr.mxu1 %v1968_v8  ;;  %vm1969_vm1 = vmmov 0   ;;  %s1970_s7 = smov 64   ;;  %s1971_s8 = smov 96   ;;  %vm161_vm2 = vcmask 64512  }
  0x38   :  { %v62_v5 = vld [vmem:[#allocation2] sm:$0xff]  ;;  %v1804_v6 = vpack.c.bf16 %v67_v4, %v66_v2  ;;  %v63_v7 = vld [vmem:[#allocation2 + $0x8] sm:$0xff]  ;;  %1711 = vmatprep.mubr.msk.f32.mxu1 %vm1969_vm1, %v1968_v8  ;;  %s1972_s9 = smov 88   ;;  %s1973_s10 = smov 120   ;;  %vm832_vm3 = vcmask 130048   ;;  %vm834_vm4 = vcmask 195584  }
  0x39   :  { %1706 = vmatprep.mubr.msk.f32.mxu0 %vm75_vm0, %v62_v5  ;;  %1801 = vmatprep.subr.bf16.mxu0 %v1800_v3  ;;  %v1624_v9 = vld [vmem:[%s2242_s2] ss:$0 sm:$0xff]  ;;  %s1974_s2 = smov 80   ;;  %s1975_s11 = smov 112  }
  0x3a   :  { %1803 = vmatpush3.bf16.msra.mxu0 %v1800_v3  ;;  %s1976_s12 = smov 72   ;;  %s1977_s13 = smov 104  }
  0x3b   :  { %1805 = vmatprep.subr.bf16.mxu0 %v1804_v6  ;;  %s1978_s14 = smov 56   ;;  %s1979_s15 = smov 48  }
  0x3c   :  { %s1980_s16 = smov 40   ;;  %s1981_s1 = smov 16  }
  0x3d   :  { %s1982_s17 = smov 24   ;;  %s1983_s20 = smov [#allocation8]  }
  0x3e   :  { %1807 = vmatpush3.bf16.msra.mxu0 %v1804_v6  ;;  %s1611_s22 = sshll.u32 %s1983_s20, 4  ;;  %s1612_s22 = int_to_ptr.vmem [resolvable:$true] %s1611_s22 }
  0x3f   :  { %1729 = vmatprep.subr.mxu0 %v1968_v8  ;;  %s1935_s23 = scalar_lea.vmem %s1612_s22, 256  ;;  %p1940_p11 = scmp.lt.s32.totalorder %s1612_s22, %s1612_s22 }
  0x40   :  { %p1936_p10 = scmp.ne.s32.totalorder %s1612_s22, %s1935_s23  ;;  %p1941_p12 = scmp.lt.s32.totalorder %s1935_s23, %s1935_s23 }
  0x41   :  { %1707 = vmatmul.mubr.msk.f32.vlgmr.msra.gmra.mrb[0].mxu0 %vm75_vm0, %v63_v7 }
  0x42   :  { %1731 = vmatprep.mubr.msk.f32.mxu0 %vm1969_vm1, %v1968_v8  ;;  %p1942_p13 = por %p1941_p12, %p1940_p11 }
  0x44   :  { %p1943_p0 = pnand %p1942_p13, %p1936_p10 }
 0x114   :  { %v1708_v10 = vpop.f32.mrb[0].mxu0 }
 0x115   :  { %v148_v11 = vpop.f32.mrb[1].mxu0  ;;  %v2087_v14 = vadd.f32 %v1708_v10, %v1624_v9 }
 0x116   :  { %v2077_v12 = vadd.f32 %v1624_v9, %v148_v11 }
 0x117   :  { %v836_v15 = vmul.f32 0.35355338, %v2087_v14 }
 0x118   :  { %246 = vrot.lane.b32.xlu1 %v2077_v12, %s1970_s7  ;;  %159 = vrot.lane.b32.xlu0 %v2077_v12, %s1971_s8  ;;  %v157_v13 = vmul.f32 0.35355338, %v2077_v12 }
 0x11c   :  { %326 = vrot.lane.b32.xlu1 %v2077_v12, %s1972_s9 }
 0x120   :  { %324 = vrot.lane.b32.xlu1 %v157_v13, %s1973_s10 }
 0x124   :  { %491 = vrot.lane.b32.xlu1 %v2077_v12, %s1974_s2 }
 0x128   :  { %489 = vrot.lane.b32.xlu1 %v157_v13, %s1975_s11 }
 0x12c   :  { %656 = vrot.lane.b32.xlu1 %v2077_v12, %s1976_s12 }
 0x130   :  { %654 = vrot.lane.b32.xlu1 %v157_v13, %s1977_s13 }
 0x134   :  { %838 = vrot.lane.b32.xlu1 %v2087_v14, %s1971_s8 }
 0x138   :  { %1004 = vrot.lane.b32.xlu1 %v2087_v14, %s1972_s9 }
 0x13c   :  { %1169 = vrot.lane.b32.xlu1 %v2087_v14, %s1974_s2 }
 0x140   :  { %1167 = vrot.lane.b32.xlu1 %v836_v15, %s1975_s11 }
 0x144   :  { %1334 = vrot.lane.b32.xlu1 %v2087_v14, %s1976_s12 }
 0x148   :  { %1332 = vrot.lane.b32.xlu1 %v836_v15, %s1977_s13 }
 0x14c   :  { %411 = vrot.lane.b32.xlu1 %v2077_v12, %s1978_s14 }
 0x18a   :  { %v247_v16 = vpop.permute.xlu1 %246  ;;  %v160_v17 = vpop.permute.xlu0 %159 }
 0x18b   :  { %1710 = vmatpush3.xpose.msk.msra.mxu1 %vm161_vm2, %v160_v17 }
 0x18c   :  { %1714 = vmatprep.subr.mxu1 %v1968_v8 }
 0x18e   :  { %v2098_v18 = vpop.permute.xlu1 %326  ;;  %1712 = vmatmul.mubr.msk.f32.vlgmr.msra.gmra.mrb[0].mxu1 %vm161_vm2, %v157_v13 }
 0x18f   :  { %1715 = vmatpush3.msra.mxu1 %v247_v16  ;;  %1716 = vmatprep.mubr.msk.f32.mxu1 %vm1969_vm1, %v1968_v8 }
 0x190   :  { %1719 = vmatprep.subr.mxu1 %v1968_v8 }
 0x192   :  { %v2104_v19 = vpop.permute.xlu1 %324 }
 0x196   :  { %v492_v20 = vpop.permute.xlu1 %491 }
 0x197   :  { %1730 = vmatpush3.xpose.msk.msra.mxu0 %vm161_vm2, %v492_v20 }
 0x198   :  { %1739 = vmatprep.subr.mxu0 %v1968_v8 }
 0x19a   :  { %v490_v21 = vpop.permute.xlu1 %489 }
 0x19b   :  { %1732 = vmatmul.mubr.msk.f32.vlgmr.msra.gmra.mrb[2].mxu0 %vm161_vm2, %v490_v21 }
 0x19c   :  { %1741 = vmatprep.mubr.msk.f32.mxu0 %vm1969_vm1, %v1968_v8 }
 0x19e   :  { %v657_v22 = vpop.permute.xlu1 %656 }
 0x19f   :  { %1740 = vmatpush3.xpose.msk.msra.mxu0 %vm161_vm2, %v657_v22 }
 0x1a0   :  { %1749 = vmatprep.subr.mxu0 %v1968_v8 }
 0x1a2   :  { %v655_v23 = vpop.permute.xlu1 %654 }
 0x1a3   :  { %1742 = vmatmul.mubr.msk.f32.vlgmr.msra.gmra.mrb[4].mxu0 %vm161_vm2, %v655_v23 }
 0x1a4   :  { %1751 = vmatprep.mubr.msk.f32.mxu0 %vm1969_vm1, %v1968_v8 }
 0x1a6   :  { %v839_v24 = vpop.permute.xlu1 %838 }
 0x1a7   :  { %1750 = vmatpush3.xpose.msk.msra.mxu0 %vm161_vm2, %v839_v24 }
 0x1a8   :  { %1759 = vmatprep.subr.mxu0 %v1968_v8 }
 0x1aa   :  { %1752 = vmatmul.mubr.msk.f32.vlgmr.msra.gmra.mrb[6].mxu0 %vm161_vm2, %v836_v15  ;;  %v1005_v25 = vpop.permute.xlu1 %1004 }
 0x1ab   :  { %1760 = vmatpush3.xpose.msk.msra.mxu0 %vm161_vm2, %v1005_v25  ;;  %1761 = vmatprep.mubr.msk.f32.mxu0 %vm1969_vm1, %v1968_v8 }
 0x1ac   :  { %1769 = vmatprep.subr.mxu0 %v1968_v8 }
 0x1ae   :  { %v1170_v38 = vpop.permute.xlu1 %1169 }
 0x1b2   :  { %v1168_v39 = vpop.permute.xlu1 %1167 }
 0x1b6   :  { %v1335_v44 = vpop.permute.xlu1 %1334 }
 0x1ba   :  { %v1333_v45 = vpop.permute.xlu1 %1332 }
 0x1be   :  { %v412_v47 = vpop.permute.xlu1 %411 }
 0x261   :  { %v233_v26 = vpop.f32.mrb[0].mxu1 }
 0x262   :  { %v1713_v27 = vpop.f32.mrb[1].mxu1  ;;  %v237_v28 = vsel %vm161_vm2, %v233_v26, -inf }
 0x263   :  { %238 = vmax.xlane.f32.xlu0 %v237_v28 }
 0x26e   :  { %v2124_v29 = vpop.f32.mrb[2].mxu0 }
 0x26f   :  { %v1733_v30 = vpop.f32.mrb[3].mxu0  ;;  %v567_v36 = vsel %vm161_vm2, %v2124_v29, -inf }
 0x276   :  { %v2126_v31 = vpop.f32.mrb[4].mxu0 }
 0x277   :  { %v1743_v32 = vpop.f32.mrb[5].mxu0  ;;  %v732_v37 = vsel %vm161_vm2, %v2126_v31, -inf }
 0x279   :  { %1002 = vrot.lane.b32.xlu0 %v836_v15, %s1973_s10 }
 0x27d   :  { %v2129_v33 = vpop.f32.mrb[6].mxu0 }
 0x27e   :  { %v1753_v34 = vpop.f32.mrb[7].mxu0  ;;  %v915_v35 = vsel %vm161_vm2, %v2129_v33, -inf }
 0x27f   :  { %916 = vmax.xlane.f32.xlu1 %v915_v35 }
 0x298   :  { %568 = vmax.xlane.f32.xlu0 %v567_v36 }
 0x29c   :  { %733 = vmax.xlane.f32.xlu0 %v732_v37 }
 0x2b2   :  { %576 = vrot.lane.b32.xlu0 %v2077_v12, %s1979_s15 }
 0x2f0   :  { %v239_v40 = vpop.xlane.xlu0 %238 }
 0x2f1   :  { %v240_v41 = vsub.f32 %v233_v26, %v239_v40 }
 0x2f3   :  { %v241_v42 = vmul.f32 1.442695, %v240_v41 }
 0x2f4   :  { %v1003_v43 = vpop.permute.xlu0 %1002 }
 0x2f5   :  { %1837 = vpow2.f32 %v241_v42  ;;  %1762 = vmatmul.mubr.msk.f32.vlgmr.msra.gmra.mrb[8].mxu0 %vm161_vm2, %v1003_v43 }
 0x2f6   :  { %1770 = vmatpush3.xpose.msk.msra.mxu0 %vm161_vm2, %v1170_v38  ;;  %1771 = vmatprep.mubr.msk.f32.mxu0 %vm1969_vm1, %v1968_v8 }
 0x2f7   :  { %1779 = vmatprep.subr.mxu0 %v1968_v8 }
 0x2f9   :  { %1772 = vmatmul.mubr.msk.f32.vlgmr.msra.gmra.mrb[10].mxu0 %vm161_vm2, %v1168_v39 }
 0x2fa   :  { %1780 = vmatpush3.xpose.msk.msra.mxu0 %vm161_vm2, %v1335_v44  ;;  %1781 = vmatprep.mubr.msk.f32.mxu0 %vm1969_vm1, %v1968_v8 }
 0x2fd   :  { %1782 = vmatmul.mubr.msk.f32.vlgmr.msra.gmra.mrb[12].mxu0 %vm161_vm2, %v1333_v45 }
 0x2ff   :  { %v2149_v46 = vpop.eup %1837 }
 0x300   :  { %1717 = vmatmul.mubr.msk.f32.vlgmr.msra.gmra.mrb[2].mxu1 %vm161_vm2, %v2149_v46  ;;  %v243_v37 = vsel %vm161_vm2, %v2149_v46, 0.0 }
 0x301   :  { %1720 = vmatpush3.xpose.msk.msra.mxu1 %vm161_vm2, %v2098_v18  ;;  %1721 = vmatprep.mubr.msk.f32.mxu1 %vm1969_vm1, %v1968_v8 }
 0x302   :  { %1724 = vmatprep.subr.mxu1 %v1968_v8 }
 0x304   :  { %1722 = vmatmul.mubr.msk.f32.vlgmr.msra.gmra.mrb[4].mxu1 %vm161_vm2, %v2104_v19 }
 0x305   :  { %1725 = vmatpush3.msra.mxu1 %v412_v47  ;;  %1726 = vmatprep.mubr.msk.f32.mxu1 %vm1969_vm1, %v1968_v8 }
 0x306   :  { %1734 = vmatprep.subr.mxu1 %v1968_v8 }
 0x30c   :  { %v917_v11 = vpop.xlane.xlu1 %916 }
 0x325   :  { %v569_v62 = vpop.xlane.xlu0 %568 }
 0x326   :  { %v570_v63 = vsub.f32 %v2124_v29, %v569_v62  ;;  %v1515_v62 = vld [vmem:[#allocation7 + $0x18] sm:$0xff] }
 0x328   :  { %v571_v0 = vmul.f32 1.442695, %v570_v63 }
 0x329   :  { %v734_v3 = vpop.xlane.xlu0 %733 }
 0x32a   :  { %1839 = vpow2.f32 %v571_v0  ;;  %v735_v5 = vsub.f32 %v2126_v31, %v734_v3 }
 0x32c   :  { %v736_v9 = vmul.f32 1.442695, %v735_v5 }
 0x32d   :  { %v577_v4 = vpop.permute.xlu0 %576 }
 0x334   :  { %v1840_v1 = vpop.eup %1839 }
 0x335   :  { %v573_v2 = vsel %vm161_vm2, %v1840_v1, 0.0 }
 0x3c8   :  { %v1076_v48 = vpop.f32.mrb[8].mxu0 }
 0x3c9   :  { %v1763_v49 = vpop.f32.mrb[9].mxu0  ;;  %v1080_v50 = vsel %vm161_vm2, %v1076_v48, -inf }
 0x3ca   :  { %1081 = vmax.xlane.f32.xlu0 %v1080_v50 }
 0x3cc   :  { %v1241_v51 = vpop.f32.mrb[10].mxu0 }
 0x3cd   :  { %v1773_v52 = vpop.f32.mrb[11].mxu0  ;;  %v1245_v53 = vsel %vm161_vm2, %v1241_v51, -inf }
 0x3ce   :  { %1246 = vmax.xlane.f32.xlu1 %v1245_v53  ;;  %v1513_v53 = vld [vmem:[#allocation7 + $0x8] sm:$0xff] }
 0x3d0   :  { %v1406_v54 = vpop.f32.mrb[12].mxu0 }
 0x3d1   :  { %v1783_v55 = vpop.f32.mrb[13].mxu0  ;;  %v1410_v56 = vsel %vm161_vm2, %v1406_v54, -inf }
 0x3d2   :  { %1411 = vmax.xlane.f32.xlu0 %v1410_v56 }
 0x3d3   :  { %v2166_v57 = vpop.f32.mrb[2].mxu1 }
 0x3d4   :  { %v1718_v58 = vpop.f32.mrb[3].mxu1 }
 0x3d7   :  { %v398_v59 = vpop.f32.mrb[4].mxu1 }
 0x3d8   :  { %v1723_v60 = vpop.f32.mrb[5].mxu1  ;;  %v402_v61 = vsel %vm161_vm2, %v398_v59, -inf }
 0x3d9   :  { %403 = vmax.xlane.f32.xlu1 %v402_v61  ;;  %v1514_v61 = vld [vmem:[#allocation7 + $0x10] sm:$0xff] }
 0x3da   :  { %v1812_v63 = vpack.c.bf16 %v1515_v62, %v1514_v61 }
 0x3e8   :  { %1254 = vrot.lane.b32.xlu0 %v2087_v14, %s1979_s15 }
 0x3ea   :  { %741 = vrot.lane.b32.xlu1 %v2077_v12, %s1980_s16  ;;  %v918_v12 = vsub.f32 %v2129_v33, %v917_v11 }
 0x3ec   :  { %v919_v15 = vmul.f32 1.442695, %v918_v12 }
 0x3ee   :  { %924 = vrot.lane.b32.xlu1 %v2087_v14, %s1970_s7 }
 0x3f2   :  { %1089 = vrot.lane.b32.xlu1 %v2087_v14, %s1978_s14 }
 0x3f6   :  { %1419 = vrot.lane.b32.xlu1 %v2087_v14, %s1980_s16 }
 0x41a   :  { %574 = vadd.xlane.f32.xlu1 %v573_v2 }
 0x457   :  { %v1082_v6 = vpop.xlane.xlu0 %1081 }
 0x458   :  { %v1083_v7 = vsub.f32 %v1076_v48, %v1082_v6 }
 0x45a   :  { %v1084_v10 = vmul.f32 1.442695, %v1083_v7 }
 0x45b   :  { %v1247_v16 = vpop.xlane.xlu1 %1246 }
 0x45c   :  { %1841 = vpow2.f32 %v1084_v10  ;;  %v1248_v18 = vsub.f32 %v1241_v51, %v1247_v16 }
 0x45d   :  { %1843 = vpow2.f32 %v736_v9 }
 0x45e   :  { %v1249_v24 = vmul.f32 1.442695, %v1248_v18 }
 0x45f   :  { %v1412_v13 = vpop.xlane.xlu0 %1411 }
 0x460   :  { %v1413_v14 = vsub.f32 %v1406_v54, %v1412_v13 }
 0x462   :  { %v1414_v17 = vmul.f32 1.442695, %v1413_v14 }
 0x463   :  { %v1255_v39 = vpop.permute.xlu0 %1254 }
 0x464   :  { %1845 = vpow2.f32 %v1414_v17 }
 0x465   :  { %1847 = vpow2.f32 %v919_v15 }
 0x466   :  { %v1842_v19 = vpop.eup %1841  ;;  %v404_v20 = vpop.xlane.xlu1 %403 }
 0x467   :  { %v405_v21 = vsub.f32 %v398_v59, %v404_v20  ;;  %v1086_v22 = vsel %vm161_vm2, %v1842_v19, 0.0  ;;  %v1844_v23 = vpop.eup %1843 }
 0x468   :  { %1087 = vadd.xlane.f32.xlu0 %v1086_v22  ;;  %v738_v26 = vsel %vm161_vm2, %v1844_v23, 0.0 }
 0x469   :  { %v406_v25 = vmul.f32 1.442695, %v405_v21 }
 0x46a   :  { %v742_v32 = vpop.permute.xlu1 %741 }
 0x46b   :  { %1849 = vpow2.f32 %v406_v25 }
 0x46c   :  { %739 = vadd.xlane.f32.xlu0 %v738_v26  ;;  %1851 = vpow2.f32 %v1249_v24 }
 0x46e   :  { %v1846_v27 = vpop.eup %1845  ;;  %v925_v36 = vpop.permute.xlu1 %924 }
 0x46f   :  { %v1416_v28 = vsel %vm161_vm2, %v1846_v27, 0.0  ;;  %v1848_v29 = vpop.eup %1847 }
 0x470   :  { %1417 = vadd.xlane.f32.xlu1 %v1416_v28  ;;  %v921_v30 = vsel %vm161_vm2, %v1848_v29, 0.0 }
 0x472   :  { %v1090_v38 = vpop.permute.xlu1 %1089 }
 0x474   :  { %922 = vadd.xlane.f32.xlu1 %v921_v30 }
 0x475   :  { %v1850_v31 = vpop.eup %1849 }
 0x476   :  { %1727 = vmatmul.mubr.msk.f32.vlgmr.msra.gmra.mrb[6].mxu1 %vm161_vm2, %v1850_v31  ;;  %v408_v33 = vsel %vm161_vm2, %v1850_v31, 0.0  ;;  %v1852_v34 = vpop.eup %1851  ;;  %v1420_v40 = vpop.permute.xlu1 %1419 }
 0x477   :  { %1735 = vmatpush3.msra.mxu1 %v577_v4  ;;  %409 = vadd.xlane.f32.xlu0 %v408_v33  ;;  %v1251_v35 = vsel %vm161_vm2, %v1852_v34, 0.0 }
 0x478   :  { %1736 = vmatprep.mubr.msk.f32.mxu1 %vm1969_vm1, %v1968_v8  ;;  %1744 = vmatprep.subr.mxu1 %v1968_v8 }
 0x47a   :  { %1737 = vmatmul.mubr.msk.f32.vlgmr.msra.gmra.mrb[8].mxu1 %vm161_vm2, %v1840_v1 }
 0x47b   :  { %1745 = vmatpush3.msra.mxu1 %v742_v32  ;;  %1252 = vadd.xlane.f32.xlu0 %v1251_v35 }
 0x47c   :  { %1746 = vmatprep.mubr.msk.f32.mxu1 %vm1969_vm1, %v1968_v8  ;;  %1754 = vmatprep.subr.mxu1 %v1968_v8 }
 0x47e   :  { %1747 = vmatmul.mubr.msk.f32.vlgmr.msra.gmra.mrb[10].mxu1 %vm161_vm2, %v1844_v23 }
 0x47f   :  { %1755 = vmatpush3.msra.mxu1 %v925_v36  ;;  %244 = vadd.xlane.f32.xlu0 %v243_v37 }
 0x480   :  { %1756 = vmatprep.mubr.msk.f32.mxu1 %vm1969_vm1, %v1968_v8  ;;  %1764 = vmatprep.subr.mxu1 %v1968_v8 }
 0x482   :  { %1757 = vmatmul.mubr.msk.f32.vlgmr.msra.gmra.mrb[12].mxu1 %vm161_vm2, %v1848_v29 }
 0x483   :  { %1765 = vmatpush3.msra.mxu1 %v1090_v38  ;;  %1766 = vmatprep.mubr.msk.f32.mxu1 %vm1969_vm1, %v1968_v8 }
 0x484   :  { %1774 = vmatprep.subr.mxu1 %v1968_v8 }
 0x486   :  { %1767 = vmatmul.mubr.msk.f32.vlgmr.msra.gmra.mrb[14].mxu1 %vm161_vm2, %v1842_v19 }
 0x487   :  { %1775 = vmatpush3.msra.mxu1 %v1255_v39  ;;  %1776 = vmatprep.mubr.msk.f32.mxu1 %vm1969_vm1, %v1968_v8 }
 0x488   :  { %1784 = vmatprep.subr.mxu1 %v1968_v8 }
 0x48a   :  { %1777 = vmatmul.mubr.msk.f32.vlgmr.msra.gmra.mrb[16].mxu1 %vm161_vm2, %v1852_v34 }
 0x48b   :  { %1785 = vmatpush3.msra.mxu1 %v1420_v40  ;;  %1786 = vmatprep.mubr.msk.f32.mxu1 %vm1969_vm1, %v1968_v8  ;;  %v1512_v8 = vld [vmem:[#allocation7] sm:$0xff] }
 0x48c   :  { %v1808_v54 = vpack.c.bf16 %v1513_v53, %v1512_v8 }
 0x48e   :  { %1787 = vmatmul.mubr.msk.f32.vlgmr.msra.gmra.mrb[18].mxu1 %vm161_vm2, %v1846_v27  ;;  %1809 = vmatprep.subr.bf16.mxu0 %v1808_v54 }
 0x48f   :  { %1811 = vmatpush3.bf16.msra.mxu0 %v1808_v54 }
 0x490   :  { %1813 = vmatprep.subr.bf16.mxu0 %v1812_v63 }
 0x493   :  { %1815 = vmatpush3.bf16.msra.mxu0 %v1812_v63 }
 0x4a7   :  { %v575_v44 = vpop.xlane.xlu1 %574 }
 0x4f5   :  { %v1088_v41 = vpop.xlane.xlu0 %1087 }
 0x4f9   :  { %v740_v42 = vpop.xlane.xlu0 %739 }
 0x4fd   :  { %v1418_v0 = vpop.xlane.xlu1 %1417 }
 0x501   :  { %v923_v17 = vpop.xlane.xlu1 %922 }
 0x504   :  { %v410_v43 = vpop.xlane.xlu0 %409 }
 0x505   :  { %1853 = vrcp.f32 %v410_v43 }
 0x506   :  { %1855 = vrcp.f32 %v575_v44 }
 0x507   :  { %1857 = vrcp.f32 %v740_v42 }
 0x508   :  { %1859 = vrcp.f32 %v1088_v41  ;;  %v1253_v55 = vpop.xlane.xlu0 %1252 }
 0x509   :  { %1861 = vrcp.f32 %v1253_v55 }
 0x50a   :  { %1863 = vrcp.f32 %v1418_v0 }
 0x50c   :  { %v245_v16 = vpop.xlane.xlu0 %244 }
 0x50d   :  { %1865 = vrcp.f32 %v245_v16 }
 0x50e   :  { %1867 = vrcp.f32 %v923_v17 }
 0x50f   :  { %v1854_v45 = vpop.eup %1853 }
 0x510   :  { %v1856_v49 = vpop.eup %1855 }
 0x511   :  { %v1858_v56 = vpop.eup %1857 }
 0x512   :  { %v1860_v3 = vpop.eup %1859 }
 0x513   :  { %v1862_v7 = vpop.eup %1861 }
 0x514   :  { %v1864_v12 = vpop.eup %1863 }
 0x517   :  { %v1866_v18 = vpop.eup %1865 }
 0x518   :  { %v323_v21 = vmul.f32 %v1866_v18, %v2166_v57  ;;  %v1868_v26 = vpop.eup %1867  ;;  %v1651_v57 = vld [vmem:[%s2244_s4] ss:$0 sm:$0xff] }
 0x549   :  { %v483_v46 = vpop.f32.mrb[6].mxu1 }
 0x54a   :  { %v488_v47 = vmul.f32 %v1854_v45, %v483_v46  ;;  %v1728_v48 = vpop.f32.mrb[7].mxu1 }
 0x54c   :  { %820 = vrot.lane.b32.xlu0 %v488_v47, %s1966_s6 }
 0x54d   :  { %v648_v50 = vpop.f32.mrb[8].mxu1 }
 0x54e   :  { %v653_v51 = vmul.f32 %v1856_v49, %v648_v50  ;;  %v1738_v52 = vpop.f32.mrb[9].mxu1 }
 0x550   :  { %824 = vrot.lane.b32.xlu1 %v653_v51, %s1981_s1 }
 0x551   :  { %v813_v58 = vpop.f32.mrb[10].mxu1 }
 0x552   :  { %v818_v59 = vmul.f32 %v1858_v56, %v813_v58  ;;  %v1748_v60 = vpop.f32.mrb[11].mxu1 }
 0x554   :  { %828 = vrot.lane.b32.xlu1 %v818_v59, %s1982_s17 }
 0x555   :  { %v996_v1 = vpop.f32.mrb[12].mxu1 }
 0x556   :  { %v1758_v2 = vpop.f32.mrb[13].mxu1  ;;  %v1001_v28 = vmul.f32 %v1868_v26, %v996_v1 }
 0x559   :  { %v1161_v4 = vpop.f32.mrb[14].mxu1 }
 0x55a   :  { %v1166_v5 = vmul.f32 %v1860_v3, %v1161_v4  ;;  %v1768_v6 = vpop.f32.mrb[15].mxu1 }
 0x55c   :  { %1498 = vrot.lane.b32.xlu1 %v1166_v5, %s1966_s6 }
 0x55d   :  { %v1326_v9 = vpop.f32.mrb[16].mxu1 }
 0x55e   :  { %v1331_v10 = vmul.f32 %v1862_v7, %v1326_v9  ;;  %v1778_v11 = vpop.f32.mrb[17].mxu1 }
 0x560   :  { %1502 = vrot.lane.b32.xlu0 %v1331_v10, %s1981_s1 }
 0x561   :  { %v1491_v13 = vpop.f32.mrb[18].mxu1 }
 0x562   :  { %v1496_v14 = vmul.f32 %v1864_v12, %v1491_v13  ;;  %v1788_v15 = vpop.f32.mrb[19].mxu1 }
 0x564   :  { %1506 = vrot.lane.b32.xlu1 %v1496_v14, %s1982_s17 }
 0x5be   :  { %v821_v19 = vpop.permute.xlu0 %820 }
 0x5bf   :  { %v831_v22 = vsel %vm161_vm2, %v323_v21, %v821_v19 }
 0x5c2   :  { %v825_v20 = vpop.permute.xlu1 %824 }
 0x5c3   :  { %v833_v23 = vsel %vm832_vm3, %v831_v22, %v825_v20 }
 0x5c6   :  { %v829_v24 = vpop.permute.xlu1 %828 }
 0x5c7   :  { %v835_v25 = vsel %vm834_vm4, %v833_v23, %v829_v24 }
 0x5c8   :  { %1797 = vmatprep.mubr.msk.f32.mxu0 %vm75_vm0, %v835_v25 }
 0x5ce   :  { %v1499_v27 = vpop.permute.xlu1 %1498 }
 0x5cf   :  { %v1509_v30 = vsel %vm161_vm2, %v1001_v28, %v1499_v27 }
 0x5d2   :  { %v1503_v29 = vpop.permute.xlu0 %1502 }
 0x5d3   :  { %v1510_v31 = vsel %vm832_vm3, %v1509_v30, %v1503_v29 }
 0x5d6   :  { %v1507_v32 = vpop.permute.xlu1 %1506 }
 0x5d7   :  { %v1511_v33 = vsel %vm834_vm4, %v1510_v31, %v1507_v32 }
 0x5d8   :  { %1798 = vmatmul.mubr.msk.f32.vlgmr.msra.gmra.mrb[14].mxu0 %vm75_vm0, %v1511_v33 }
 0x6ab   :  { %v1799_v34 = vpop.f32.mrb[14].mxu0 }
 0x6ac   :  { %v1601_v35 = vadd.f32 %v1799_v34, %v1651_v57  ;;  %v1595_v36 = vpop.f32.mrb[15].mxu0 }
 0x6ad   :  { %v1596_v37 = vadd.f32 %v1651_v57, %v1595_v36 }
 0x6ae   :  { %1605 = vst.msk [vmem:[#allocation8 + $0x8] sm:$0xff] %vm75_vm0, %v1601_v35 }
 0x6af   :  { %1604 = vst.msk [vmem:[#allocation8] sm:$0xff] %vm75_vm0, %v1596_v37 }
 0x6b0   :  { %1946 = shalt.err (!%p1943_p0)
}
 0x6b1   :  { %s1947_s25 = scalar_lea.hbm %s2245_s5, 256 }
 0x6b2   :  { %p1948_p1 = scmp.ne.s32.totalorder %s2245_s5, %s1947_s25  ;;  %p1951_p2 = scmp.lt.u32.totalorder %s1947_s25, %s2245_s5 }
 0x6b4   :  { %p1953_p3 = pnand %p1951_p2, %p1948_p1 }
 0x6b6   :  { %1956 = shalt.err (!%p1953_p3)
}
 0x6b7   :  { %1617 = dma.vmem_to_hbm [thread:$0]  %s1612_s22, 256, %s2245_s5, [#allocation4], %s1965_s30, %s1965_s30, %s1966_s6  }
 0x6b8   :  { %1961 = dma.done.wait [#allocation4], 256  }
 0x6b9   :  { %1962 = vsyncadd [#allocation4], 4294967040 }
 0x6ba   :  { %1621 = vsyncpa [#allocation3], 1 }
 0x6bb   :  { %1622 = vsyncpa [#allocation6], 1 }
 0x6bc   :  { %1623 = vsyncpa [#allocation4], 1 }

</bundles_post_ra>
